<compile_context>
chip_gen: v6e
topology: v6e:2x2x1
jax: 0.10.0
libtpu: 0.0.40
codegen_flags: <defaults>
</compile_context>

<pallas_src>
import functools

import jax
import jax.numpy as jnp
from jax.experimental import pallas as pl
from jax.experimental.pallas import tpu as pltpu

_LANE = 128
_SUBLANE_BF16 = 16  # native bf16 sublane tiling is (16, 128)


def _round_up(n, m):
    return ((n + m - 1) // m) * m


# --------------------------------------------------------------------------- #
# Kernels
# --------------------------------------------------------------------------- #
def _mlp_body(x_ref, w1_ref, b1_ref, w2_ref, b2_ref, w3_ref, b3_ref):
    """Fused 3-layer MLP body for one batch tile (bf16 MXU, f32 accumulate)."""
    h = jnp.dot(x_ref[...], w1_ref[...], preferred_element_type=jnp.float32)
    h = jnp.maximum(h + b1_ref[...], 0.0).astype(jnp.bfloat16)
    h = jnp.dot(h, w2_ref[...], preferred_element_type=jnp.float32)
    h = jnp.maximum(h + b2_ref[...], 0.0).astype(jnp.bfloat16)
    q = jnp.dot(h, w3_ref[...], preferred_element_type=jnp.float32)
    return q + b3_ref[...]


def _dqn_kernel(x_ref, w1_ref, b1_ref, w2_ref, b2_ref, w3_ref, b3_ref, o_ref):
    o_ref[...] = _mlp_body(x_ref, w1_ref, b1_ref, w2_ref, b2_ref, w3_ref, b3_ref)


def _dqn_kernel_masked(x_ref, w1_ref, b1_ref, w2_ref, b2_ref, w3_ref, b3_ref,
                       mask_ref, o_ref):
    q = _mlp_body(x_ref, w1_ref, b1_ref, w2_ref, b2_ref, w3_ref, b3_ref)
    o_ref[...] = jnp.where(mask_ref[...] != 0.0, q, -jnp.inf)


# --------------------------------------------------------------------------- #
# Parameter preparation (hoisted out of the per-call path)
# --------------------------------------------------------------------------- #
def prepare_dqn_params(params):
    """Pad hidden dims to 128 lanes and cast matmul operands to bf16, ONCE.

    Input / output feature dims are left un-padded (full-dim blocks handle them);
    hidden-layer padding lanes are zero so ReLU keeps them at zero end to end.
    Returns (w1, b1, w2, b2, w3, b3) ready for dqn_forward.
    """
    w1, b1, w2, b2, w3, b3 = [jnp.asarray(p) for p in params]
    in_dim, h1 = w1.shape
    h2 = w2.shape[1]
    out_dim = w3.shape[1]
    h1_p = _round_up(h1, _LANE)
    h2_p = _round_up(h2, _LANE)

    def padw(w, rows, cols):
        return jnp.pad(
            w, ((0, rows - w.shape[0]), (0, cols - w.shape[1]))
        ).astype(jnp.bfloat16)

    def padb(b, cols):
        return jnp.pad(b.astype(jnp.float32), (0, cols - b.shape[0])).reshape(1, cols)

    return (
        padw(w1, in_dim, h1_p), padb(b1, h1_p),
        padw(w2, h1_p, h2_p), padb(b2, h2_p),
        padw(w3, h2_p, out_dim), padb(b3, out_dim),
    )


def _is_prepared(params):
    return (isinstance(params, (tuple, list)) and len(params) == 6
            and hasattr(params[1], "ndim") and params[1].ndim == 2
            and params[0].dtype == jnp.bfloat16)


def _pick_batch_tile(B):
    """Pick (tb, b_pad): single step for tiny batches, else >=2 big tiles (<=1024)."""
    b16 = _round_up(B, _SUBLANE_BF16)
    if b16 <= 2 * _SUBLANE_BF16:
        tb = b16                               # tiny inference batch: 1 grid step
    else:
        # >=2 steps (lets v7x shard across both TensorCores), large tiles to
        # amortize the ~0.35us per-grid-step overhead.
        tb = min(1024, _round_up((b16 + 1) // 2, _SUBLANE_BF16))
    b_pad = _round_up(B, tb)
    return tb, b_pad


# --------------------------------------------------------------------------- #
# Forward
# --------------------------------------------------------------------------- #
@functools.partial(jax.jit, static_argnames=("apply_mask",))
def _dqn_forward_impl(x, w1, b1, w2, b2, w3, b3, mask, *, apply_mask):
    B, in_dim = x.shape
    h1_p = w1.shape[1]
    h2_p = w2.shape[1]
    out_dim = w3.shape[1]

    tb, b_pad = _pick_batch_tile(B)
    grid = (b_pad // tb,)

    # Only x is touched per call: cast to bf16 + pad batch rows.
    x_p = jnp.pad(x.astype(jnp.bfloat16), ((0, b_pad - B), (0, 0)))

    def const(shape):
        # Constant index map -> weights/biases stay resident across grid steps.
        return pl.BlockSpec(shape, lambda i: (0, 0))

    in_specs = [
        pl.BlockSpec((tb, in_dim), lambda i: (i, 0)),   # x: tiled over batch
        const((in_dim, h1_p)), const((1, h1_p)),        # W1, b1
        const((h1_p, h2_p)),   const((1, h2_p)),        # W2, b2
        const((h2_p, out_dim)), const((1, out_dim)),    # W3, b3
    ]
    operands = [x_p, w1, b1, w2, b2, w3, b3]
    kernel = _dqn_kernel
    if apply_mask:
        in_specs.append(const((1, out_dim)))            # fused action mask
        operands.append(mask.astype(jnp.float32).reshape(1, out_dim))
        kernel = _dqn_kernel_masked

    q = pl.pallas_call(
        kernel,
        out_shape=jax.ShapeDtypeStruct((b_pad, out_dim), jnp.float32),
        grid=grid,
        in_specs=in_specs,
        out_specs=pl.BlockSpec((tb, out_dim), lambda i: (i, 0)),
        compiler_params=pltpu.CompilerParams(
            dimension_semantics=("parallel",)),
    )(*operands)
    return q[:B]


def dqn_forward(x, params, action_mask=None):
    """Forward pass of DQNModel.

    `params` may be the raw [w1, b1, w2, b2, w3, b3] list or the output of
    prepare_dqn_params (preferred: keeps pad/cast glue off the per-call path).
    """
    if not _is_prepared(params):
        params = prepare_dqn_params(params)
    w1, b1, w2, b2, w3, b3 = params
    x = jnp.asarray(x)
    squeeze = x.ndim == 1
    if squeeze:
        x = x[None, :]
    if action_mask is None:
        q = _dqn_forward_impl(x, w1, b1, w2, b2, w3, b3, None, apply_mask=False)
    else:
        mask = jnp.asarray(action_mask)
        q = _dqn_forward_impl(x, w1, b1, w2, b2, w3, b3, mask, apply_mask=True)
    return q[0] if squeeze else q


def dqn_get_q_values(x, params, valid_actions_mask=None):
    """Mirrors DQNModel.get_q_values; a 1-D per-action mask is fused into the kernel."""
    if valid_actions_mask is None:
        return dqn_forward(x, params)
    mask = jnp.asarray(valid_actions_mask)
    if mask.ndim <= 1:
        # Per-action mask: applied inside the kernel epilogue (no extra HBM pass).
        return dqn_forward(x, params, action_mask=mask)
    # Per-sample (already batched) mask: plain-JAX glue, matching torch semantics.
    q = dqn_forward(x, params)
    return jnp.where(mask, q, -jnp.inf)


# --------------------------------------------------------------------------- #
# Init / reference / test
# --------------------------------------------------------------------------- #
def init_dqn_params(key, input_dim, output_dim, hidden_dims=(128, 128)):
    """Deterministic init mimicking torch.nn.Linear default U(-1/sqrt(fan_in), +)."""
    dims = [input_dim, *hidden_dims, output_dim]
    params = []
    for i in range(len(dims) - 1):
        fan_in, fan_out = dims[i], dims[i + 1]
        key, kw, kb = jax.random.split(key, 3)
        bound = 1.0 / jnp.sqrt(jnp.float32(fan_in))
        w = jax.random.uniform(kw, (fan_in, fan_out), jnp.float32, -bound, bound)
        b = jax.random.uniform(kb, (fan_out,), jnp.float32, -bound, bound)
        params.extend([w, b])
    return params


def _reference_forward(x, params):
    """Plain-JAX reference matching the kernel's bf16-operand / f32-accumulate math."""
    w1, b1, w2, b2, w3, b3 = params
    f = lambda a: a.astype(jnp.bfloat16)
    h = jnp.dot(f(x), f(w1), preferred_element_type=jnp.float32) + b1
    h = f(jnp.maximum(h, 0.0))
    h = jnp.dot(h, f(w2), preferred_element_type=jnp.float32) + b2
    h = f(jnp.maximum(h, 0.0))
    return jnp.dot(h, f(w3), preferred_element_type=jnp.float32) + b3


if __name__ == "__main__":
    # Small shapes consistent with the module: state dim 32, 16 actions, batch 8.
    B, INPUT_DIM, OUTPUT_DIM = 8, 32, 16
    HIDDEN_DIMS = (128, 128)

    key = jax.random.PRNGKey(0)
    key, kx = jax.random.split(key)
    x = jax.random.normal(kx, (B, INPUT_DIM), jnp.float32)
    raw_params = init_dqn_params(key, INPUT_DIM, OUTPUT_DIM, HIDDEN_DIMS)

    # Preferred usage: pad/cast the parameters once, reuse every forward.
    params = prepare_dqn_params(raw_params)

    q = dqn_forward(x, params)
    jax.block_until_ready(q)
    assert q.shape == (B, OUTPUT_DIM)

    ref = _reference_forward(x, raw_params)
    assert jnp.allclose(q, ref, atol=1e-2, rtol=1e-2), float(jnp.max(jnp.abs(q - ref)))

    # Raw-params path (prepares on the fly) gives identical results.
    q_raw = dqn_forward(x, raw_params)
    jax.block_until_ready(q_raw)
    assert bool(jnp.allclose(q_raw, q))

    # Single-state (1-D) inference path.
    q1 = dqn_forward(x[0], params)
    jax.block_until_ready(q1)
    assert q1.shape == (OUTPUT_DIM,)
    assert bool(jnp.allclose(q1, q[0], atol=1e-5))

    # Per-action mask path (fused into the kernel epilogue).
    mask = jnp.arange(OUTPUT_DIM) % 2 == 0
    qm = dqn_get_q_values(x, params, mask)
    jax.block_until_ready(qm)
    assert bool(jnp.all(jnp.isneginf(qm[:, 1::2])))
    assert bool(jnp.allclose(qm[:, 0::2], q[:, 0::2]))

    # Per-sample (2-D) mask path (plain-JAX glue, matching torch semantics).
    mask2d = jnp.ones((B, OUTPUT_DIM), dtype=bool).at[:, -1].set(False)
    qm2 = dqn_get_q_values(x, params, mask2d)
    jax.block_until_ready(qm2)
    assert bool(jnp.all(jnp.isneginf(qm2[:, -1])))
    assert bool(jnp.allclose(qm2[:, :-1], q[:, :-1]))

    print("KERNEL_OK")
</pallas_src>

<mosaic_0001>
module attributes {stable_mosaic.version = 11 : i64} {
  func.func @_dqn_kernel(%arg0: i32, %arg1: memref<16x32xbf16, #tpu.memory_space<vmem>>, %arg2: memref<32x128xbf16, #tpu.memory_space<vmem>>, %arg3: memref<1x128xf32, #tpu.memory_space<vmem>>, %arg4: memref<128x128xbf16, #tpu.memory_space<vmem>>, %arg5: memref<1x128xf32, #tpu.memory_space<vmem>>, %arg6: memref<128x16xbf16, #tpu.memory_space<vmem>>, %arg7: memref<1x16xf32, #tpu.memory_space<vmem>>, %arg8: memref<16x16xf32, #tpu.memory_space<vmem>>) attributes {dimension_semantics = [#tpu.dimension_semantics<parallel>], iteration_bounds = array<i64: 1>, scalar_prefetch = 0 : i64, scratch_operands = 0 : i64, tpu.core_type = #tpu.core_type<tc>, window_params = [{transform_indices = @transform_0, window_bounds = array<i64: 16, 32>}, {pipeline_mode = #tpu.pipeline_mode<synchronous>, transform_indices = @transform_1, window_bounds = array<i64: 32, 128>}, {pipeline_mode = #tpu.pipeline_mode<synchronous>, transform_indices = @transform_2, window_bounds = array<i64: 1, 128>}, {pipeline_mode = #tpu.pipeline_mode<synchronous>, transform_indices = @transform_3, window_bounds = array<i64: 128, 128>}, {pipeline_mode = #tpu.pipeline_mode<synchronous>, transform_indices = @transform_4, window_bounds = array<i64: 1, 128>}, {pipeline_mode = #tpu.pipeline_mode<synchronous>, transform_indices = @transform_5, window_bounds = array<i64: 128, 16>}, {pipeline_mode = #tpu.pipeline_mode<synchronous>, transform_indices = @transform_6, window_bounds = array<i64: 1, 16>}, {transform_indices = @transform_7, window_bounds = array<i64: 16, 16>}]} {
    %c0 = arith.constant 0 : index
    %c0_0 = arith.constant 0 : index
    %0 = vector.load %arg1[%c0, %c0_0] : memref<16x32xbf16, #tpu.memory_space<vmem>>, vector<16x32xbf16>
    %c0_1 = arith.constant 0 : index
    %c0_2 = arith.constant 0 : index
    %1 = vector.load %arg2[%c0_1, %c0_2] : memref<32x128xbf16, #tpu.memory_space<vmem>>, vector<32x128xbf16>
    %cst = arith.constant dense<0.000000e+00> : vector<16x128xf32>
    %2 = tpu.matmul %0, %1, %cst {dimension_numbers = #tpu.dot_dimension_numbers<[1], [0], [0], [1], [0, 0, 1, 1], [], []>} : vector<16x32xbf16>, vector<32x128xbf16>, vector<16x128xf32> -> vector<16x128xf32>
    %c0_3 = arith.constant 0 : index
    %c0_4 = arith.constant 0 : index
    %3 = vector.load %arg3[%c0_3, %c0_4] : memref<1x128xf32, #tpu.memory_space<vmem>>, vector<1x128xf32>
    %4 = vector.broadcast %3 : vector<1x128xf32> to vector<16x128xf32>
    %5 = arith.addf %2, %4 : vector<16x128xf32>
    %cst_5 = arith.constant 0.000000e+00 : f32
    %6 = vector.broadcast %cst_5 : f32 to vector<16x128xf32>
    %7 = arith.maximumf %5, %6 : vector<16x128xf32>
    %8 = arith.truncf %7 : vector<16x128xf32> to vector<16x128xbf16>
    %c0_6 = arith.constant 0 : index
    %c0_7 = arith.constant 0 : index
    %9 = vector.load %arg4[%c0_6, %c0_7] : memref<128x128xbf16, #tpu.memory_space<vmem>>, vector<128x128xbf16>
    %cst_8 = arith.constant dense<0.000000e+00> : vector<16x128xf32>
    %10 = tpu.matmul %8, %9, %cst_8 {dimension_numbers = #tpu.dot_dimension_numbers<[1], [0], [0], [1], [0, 0, 1, 1], [], []>} : vector<16x128xbf16>, vector<128x128xbf16>, vector<16x128xf32> -> vector<16x128xf32>
    %c0_9 = arith.constant 0 : index
    %c0_10 = arith.constant 0 : index
    %11 = vector.load %arg5[%c0_9, %c0_10] : memref<1x128xf32, #tpu.memory_space<vmem>>, vector<1x128xf32>
    %12 = vector.broadcast %11 : vector<1x128xf32> to vector<16x128xf32>
    %13 = arith.addf %10, %12 : vector<16x128xf32>
    %cst_11 = arith.constant 0.000000e+00 : f32
    %14 = vector.broadcast %cst_11 : f32 to vector<16x128xf32>
    %15 = arith.maximumf %13, %14 : vector<16x128xf32>
    %16 = arith.truncf %15 : vector<16x128xf32> to vector<16x128xbf16>
    %c0_12 = arith.constant 0 : index
    %c0_13 = arith.constant 0 : index
    %17 = vector.load %arg6[%c0_12, %c0_13] : memref<128x16xbf16, #tpu.memory_space<vmem>>, vector<128x16xbf16>
    %cst_14 = arith.constant dense<0.000000e+00> : vector<16x16xf32>
    %18 = tpu.matmul %16, %17, %cst_14 {dimension_numbers = #tpu.dot_dimension_numbers<[1], [0], [0], [1], [0, 0, 1, 1], [], []>} : vector<16x128xbf16>, vector<128x16xbf16>, vector<16x16xf32> -> vector<16x16xf32>
    %c0_15 = arith.constant 0 : index
    %c0_16 = arith.constant 0 : index
    %19 = vector.load %arg7[%c0_15, %c0_16] : memref<1x16xf32, #tpu.memory_space<vmem>>, vector<1x16xf32>
    %20 = vector.broadcast %19 : vector<1x16xf32> to vector<16x16xf32>
    %21 = arith.addf %18, %20 : vector<16x16xf32>
    %c0_17 = arith.constant 0 : index
    %c0_18 = arith.constant 0 : index
    %22 = vector.load %arg8[%c0_17, %c0_18] : memref<16x16xf32, #tpu.memory_space<vmem>>, vector<16x16xf32>
    tpu.vector_store %arg8[%c0_17, %c0_18], %21 {strides = array<i32>} : memref<16x16xf32, #tpu.memory_space<vmem>>, vector<16x16xf32>,
    return
  }
  func.func @transform_0(%arg0: i32) -> (i32, i32) {
    %c0_i32 = arith.constant 0 : i32
    %c0_i32_0 = arith.constant 0 : i32
    return %arg0, %c0_i32 : i32, i32
  }
  func.func @transform_1(%arg0: i32) -> (i32, i32) {
    %c0_i32 = arith.constant 0 : i32
    %c0_i32_0 = arith.constant 0 : i32
    %c0_i32_1 = arith.constant 0 : i32
    return %c0_i32, %c0_i32_0 : i32, i32
  }
  func.func @transform_2(%arg0: i32) -> (i32, i32) {
    %c0_i32 = arith.constant 0 : i32
    %c0_i32_0 = arith.constant 0 : i32
    %c0_i32_1 = arith.constant 0 : i32
    return %c0_i32, %c0_i32_0 : i32, i32
  }
  func.func @transform_3(%arg0: i32) -> (i32, i32) {
    %c0_i32 = arith.constant 0 : i32
    %c0_i32_0 = arith.constant 0 : i32
    %c0_i32_1 = arith.constant 0 : i32
    return %c0_i32, %c0_i32_0 : i32, i32
  }
  func.func @transform_4(%arg0: i32) -> (i32, i32) {
    %c0_i32 = arith.constant 0 : i32
    %c0_i32_0 = arith.constant 0 : i32
    %c0_i32_1 = arith.constant 0 : i32
    return %c0_i32, %c0_i32_0 : i32, i32
  }
  func.func @transform_5(%arg0: i32) -> (i32, i32) {
    %c0_i32 = arith.constant 0 : i32
    %c0_i32_0 = arith.constant 0 : i32
    %c0_i32_1 = arith.constant 0 : i32
    return %c0_i32, %c0_i32_0 : i32, i32
  }
  func.func @transform_6(%arg0: i32) -> (i32, i32) {
    %c0_i32 = arith.constant 0 : i32
    %c0_i32_0 = arith.constant 0 : i32
    %c0_i32_1 = arith.constant 0 : i32
    return %c0_i32, %c0_i32_0 : i32, i32
  }
  func.func @transform_7(%arg0: i32) -> (i32, i32) {
    %c0_i32 = arith.constant 0 : i32
    %c0_i32_0 = arith.constant 0 : i32
    return %arg0, %c0_i32 : i32, i32
  }
}

</mosaic_0001>

<bundles_post_ra>
// kernel: _dqn_forward_impl.1
= control target key start
LH: loop header
LB: loop body
LE: loop exit
PB: predicated region body
PF: predicated region fallthrough
CT: control target
= control target key end

     0   :  { %v452_v0 = vmov 0.0   ;;  %vm453_vm0 = vmmov 0   ;;  %vm57_vm1 = vcmask 261120   ;;  %vm332_vm2 = vcmask 130048   ;;  %s590_s1 = inlined_call_operand.vmem [shape: bf16[32,128], index: 1, kind: input, shape index: {}]   ;;  %s591_s3 = inlined_call_operand.vmem [shape: bf16[128,128], index: 3, kind: input, shape index: {}]   ;;  %s592_s0 = inlined_call_operand.vmem [shape: bf16[16,32], index: 0, kind: input, shape index: {}]   ;;  %s593_s5 = inlined_call_operand.vmem [shape: bf16[128,16], index: 5, kind: input, shape index: {}]   ;;  %s594_s2 = inlined_call_operand.vmem [shape: f32[1,128], index: 2, kind: input, shape index: {}]   ;;  %s595_s4 = inlined_call_operand.vmem [shape: f32[1,128], index: 4, kind: input, shape index: {}]   ;;  %s596_s6 = inlined_call_operand.vmem [shape: f32[1,16], index: 6, kind: input, shape index: {}]   ;;  %s597_s7 = inlined_call_operand.vmem [shape: f32[16,16], index: 7, kind: output, shape index: {}]  }
   0x1   :  { %383 = vmatprep.subr.bf16.mxu0 %v452_v0  ;;  %v433_v1 = vld [vmem:[%s590_s1 + $0x8] sm:$0xff]   ;;  %387 = vmatprep.mubr.msk.bf16.mxu0 %vm453_vm0, %v452_v0  ;;  %v434_v2 = vld [vmem:[%s590_s1] sm:$0xff]   ;;  %v436_v3 = vld [vmem:[%s591_s3 + $0x38] sm:$0xff]  }
   0x2   :  { %391 = vmatprep.subr.bf16.mxu1 %v452_v0  ;;  %407 = vmatprep.mubr.msk.bf16.mxu1 %vm453_vm0, %v452_v0  ;;  %v435_v4 = vld [vmem:[%s592_s0] sm:$0xff]   ;;  %v437_v5 = vld [vmem:[%s591_s3 + $0x30] sm:$0xff]   ;;  %v438_v6 = vld [vmem:[%s591_s3 + $0x28] sm:$0xff]  }
   0x3   :  { %384 = vmatpush3.bf16.msra.mxu0 %v433_v1  ;;  %392 = vmatpush3.bf16.msra.mxu1 %v436_v3  ;;  %v439_v7 = vld [vmem:[%s591_s3 + $0x20] sm:$0xff]   ;;  %v440_v8 = vld [vmem:[%s591_s3 + $0x18] sm:$0xff]   ;;  %v441_v9 = vld [vmem:[%s591_s3 + $0x10] sm:$0xff]  }
   0x4   :  { %385 = vmatprep.subr.bf16.mxu0 %v452_v0  ;;  %393 = vmatprep.subr.bf16.mxu1 %v452_v0  ;;  %v442_v10 = vld [vmem:[%s591_s3 + $0x8] sm:$0xff]   ;;  %v443_v11 = vld [vmem:[%s591_s3] sm:$0xff]   ;;  %v444_v12 = vld [vmem:[%s593_s5 + $0x38] sm:$0xff]  }
   0x5   :  { %v445_v13 = vld [vmem:[%s593_s5 + $0x30] sm:$0xff]   ;;  %v446_v14 = vld [vmem:[%s593_s5 + $0x28] sm:$0xff]   ;;  %v447_v15 = vld [vmem:[%s593_s5 + $0x20] sm:$0xff]  }
   0x6   :  { %v448_v16 = vld [vmem:[%s593_s5 + $0x18] sm:$0xff]   ;;  %v339_v17 = vld [vmem:[%s594_s2] ss:$0 sm:$0xff]  ;;  %v449_v27 = vld [vmem:[%s593_s5 + $0x10] sm:$0xff]  }
   0x7   :  { %386 = vmatpush3.bf16.msra.mxu0 %v434_v2  ;;  %394 = vmatpush3.bf16.msra.mxu1 %v437_v5  ;;  %v450_v28 = vld [vmem:[%s593_s5 + $0x8] sm:$0xff]   ;;  %v451_v29 = vld [vmem:[%s593_s5] sm:$0xff]  }
   0x8   :  { %411 = vmatprep.subr.bf16.mxu0 %v452_v0  ;;  %395 = vmatprep.subr.bf16.mxu1 %v452_v0  ;;  %v344_v30 = vld [vmem:[%s595_s4] ss:$0 sm:$0xff] }
   0x9   :  { %v353_v40 = vld [vmem:[%s596_s6] ss:$0 sm:$0xff] }
   0xa   :  { %388 = vmatmul.mubr.msk.bf16.vlgmr.msra.gmra.mxu0 %vm57_vm1, %v435_v4 }
   0xb   :  { %427 = vmatprep.mubr.msk.bf16.mxu0 %vm453_vm0, %v452_v0  ;;  %396 = vmatpush3.bf16.msra.mxu1 %v438_v6 }
   0xc   :  { %397 = vmatprep.subr.bf16.mxu1 %v452_v0  ;;  %412 = vmatpush3.bf16.msra.mxu0 %v444_v12 }
   0xd   :  { %413 = vmatprep.subr.bf16.mxu0 %v452_v0 }
   0xf   :  { %398 = vmatpush3.bf16.msra.mxu1 %v439_v7 }
  0x10   :  { %399 = vmatprep.subr.bf16.mxu1 %v452_v0  ;;  %414 = vmatpush3.bf16.msra.mxu0 %v445_v13 }
  0x11   :  { %415 = vmatprep.subr.bf16.mxu0 %v452_v0 }
  0x13   :  { %400 = vmatpush3.bf16.msra.mxu1 %v440_v8 }
  0x14   :  { %401 = vmatprep.subr.bf16.mxu1 %v452_v0  ;;  %416 = vmatpush3.bf16.msra.mxu0 %v446_v14 }
  0x15   :  { %417 = vmatprep.subr.bf16.mxu0 %v452_v0 }
  0x17   :  { %402 = vmatpush3.bf16.msra.mxu1 %v441_v9 }
  0x18   :  { %403 = vmatprep.subr.bf16.mxu1 %v452_v0  ;;  %418 = vmatpush3.bf16.msra.mxu0 %v447_v15 }
  0x19   :  { %419 = vmatprep.subr.bf16.mxu0 %v452_v0 }
  0x1b   :  { %404 = vmatpush3.bf16.msra.mxu1 %v442_v10 }
  0x1c   :  { %405 = vmatprep.subr.bf16.mxu1 %v452_v0  ;;  %420 = vmatpush3.bf16.msra.mxu0 %v448_v16 }
  0x1d   :  { %421 = vmatprep.subr.bf16.mxu0 %v452_v0 }
  0x1f   :  { %406 = vmatpush3.bf16.msra.mxu1 %v443_v11 }
  0x20   :  { %422 = vmatpush3.bf16.msra.mxu0 %v449_v27 }
  0x21   :  { %423 = vmatprep.subr.bf16.mxu0 %v452_v0 }
  0x24   :  { %424 = vmatpush3.bf16.msra.mxu0 %v450_v28 }
  0x25   :  { %425 = vmatprep.subr.bf16.mxu0 %v452_v0 }
  0x28   :  { %426 = vmatpush3.bf16.msra.mxu0 %v451_v29 }
  0xca   :  { %v95_v18 = vpop.f32.mrf.mxu0 }
  0xcb   :  { %v96_v20 = vadd.f32 %v339_v17, %v95_v18 }
  0xcc   :  { %v389_v19 = vpop.f32.mrf.mxu0 }
  0xcd   :  { %v102_v24 = vmax.f32 %v96_v20, 0.0 }
  0xce   :  { %v98_v21 = vpop.f32.mrf.mxu0 }
  0xcf   :  { %v99_v22 = vadd.f32 %v339_v17, %v98_v21 }
  0xd0   :  { %v390_v23 = vpop.f32.mrf.mxu0 }
  0xd1   :  { %v103_v25 = vmax.f32 %v99_v22, 0.0 }
  0xd3   :  { %v104_v26 = vpack.c.bf16 %v103_v25, %v102_v24 }
  0xd5   :  { %408 = vmatmul.mubr.bf16.vlgmr.msra.gmra.mxu1 %v104_v26 }
 0x195   :  { %v210_v31 = vpop.f32.mrf.mxu1 }
 0x196   :  { %v211_v33 = vadd.f32 %v344_v30, %v210_v31 }
 0x197   :  { %v409_v32 = vpop.f32.mrf.mxu1 }
 0x198   :  { %v217_v37 = vmax.f32 %v211_v33, 0.0 }
 0x199   :  { %v213_v34 = vpop.f32.mrf.mxu1 }
 0x19a   :  { %v214_v35 = vadd.f32 %v344_v30, %v213_v34 }
 0x19b   :  { %v410_v36 = vpop.f32.mrf.mxu1 }
 0x19c   :  { %v218_v38 = vmax.f32 %v214_v35, 0.0 }
 0x19e   :  { %v219_v39 = vpack.c.bf16 %v218_v38, %v217_v37 }
 0x1a0   :  { %428 = vmatmul.mubr.bf16.vlgmr.msra.gmra.mxu0 %v219_v39 }
 0x260   :  { %v325_v41 = vpop.f32.mrf.mxu0 }
 0x261   :  { %v326_v42 = vadd.f32 %v353_v40, %v325_v41 }
 0x262   :  { %v429_v43 = vpop.f32.mrf.mxu0 }
 0x263   :  { %333 = vst.msk [vmem:[%s597_s7] sm:$0xff] %vm332_vm2, %v326_v42 }
 0x264   :  { %v328_v44 = vpop.f32.mrf.mxu0 }
 0x265   :  { %v329_v45 = vadd.f32 %v353_v40, %v328_v44 }
 0x266   :  { %v430_v46 = vpop.f32.mrf.mxu0 }
 0x267   :  { %334 = vst.msk [vmem:[%s597_s7 + $0x8] sm:$0xff] %vm332_vm2, %v329_v45 }

</bundles_post_ra>
